<compile_context>
chip_gen: v7x
topology: tpu7x:2x2x1
jax: 0.10.0
libtpu: 0.0.40
codegen_flags: <defaults>
</compile_context>

<pallas_src>
import numpy as np
import jax
import jax.numpy as jnp
from jax.experimental import pallas as pl
from jax.experimental.pallas import tpu as pltpu

D = 32
MAX_LEN = 1000

LANE = 128
SUBLANE = 8
MAX_BLOCK_ELEMS = 1024 * 1024       # ~4 MiB of f32 per x/out block
SPLIT_THRESHOLD_ELEMS = 512 * 1024  # force >=2 grid steps above ~2 MiB payload
VMEM_LIMIT_BYTES = 32 << 20         # explicit: v5e default is only 16 MiB


def build_pe_table(d: int, max_len: int) -> np.ndarray:
    """Deterministic sinusoidal positional-encoding buffer (max_len, d).
    Matches the PyTorch PositionalEncoding construction (even d assumed,
    same as the reference module)."""
    position = np.arange(0, max_len, dtype=np.float32)[:, None]           # (max_len, 1)
    div_term = np.exp(np.arange(0, d, 2, dtype=np.float32)
                      * (-np.log(10000.0) / d))                           # (d/2,)
    pe = np.zeros((max_len, d), dtype=np.float32)
    pe[:, 0::2] = np.sin(position * div_term)
    pe[:, 1::2] = np.cos(position * div_term)
    return pe


def _add_pe_kernel(x_ref, pe_ref, o_ref):
    # x_ref: (br, bc) lane-dense tile of the flattened (B, S*D) view.
    # pe_ref: (1, C) fully resident flattened positional table; slice the
    # matching column window, broadcast over rows -> one vadd per vreg.
    c = pl.program_id(1)
    bc = x_ref.shape[1]
    o_ref[...] = x_ref[...] + pe_ref[:, pl.ds(c * bc, bc)]


def _choose_col_block(C: int) -> int:
    """Column block: full dim when it fits, else a multiple-of-128 divisor."""
    if C <= MAX_BLOCK_ELEMS:
        return C
    if C % LANE == 0:
        bc = (MAX_BLOCK_ELEMS // LANE) * LANE
        while bc >= LANE and C % bc != 0:
            bc -= LANE
        if bc >= LANE:
            return bc
    return C  # ragged fallback: full array dim is always a legal block dim


def _choose_row_block(B: int, bc: int) -> int:
    """Row block: multiple of 8 (sublane) or exactly B."""
    max_rows = max(1, MAX_BLOCK_ELEMS // bc)
    if B <= max_rows:
        return B
    br = min((max_rows // SUBLANE) * SUBLANE, (B // SUBLANE) * SUBLANE)
    while br >= SUBLANE:
        if B % br == 0:
            return br
        br -= SUBLANE
    return B  # no multiple-of-8 divisor: full-dim block (legal, larger tile)


def _choose_blocks(B: int, C: int) -> tuple[int, int]:
    bc = _choose_col_block(C)
    br = _choose_row_block(B, bc)
    # v7x megacore: guarantee >=2 grid steps for non-trivial payloads so both
    # TensorCores get work. No effect on v5e/v6e (single TC).
    if (B // br) * (C // bc) == 1 and B * C > SPLIT_THRESHOLD_ELEMS:
        if B % (2 * SUBLANE) == 0:
            br = B // 2
        elif C % (2 * LANE) == 0:
            bc = C // 2
    return br, bc


def positional_encoding_forward(x: jnp.ndarray, pe: jnp.ndarray) -> jnp.ndarray:
    """x: (B, S, D); pe: (max_len, D). Returns x + pe[:S] (broadcast over B)."""
    B, S, d = x.shape
    assert d == pe.shape[1]
    assert S <= pe.shape[0]

    C = S * d
    # Lane-dense 2-D views (row-major flatten keeps element correspondence).
    x2 = x.reshape(B, C)
    pe2 = pe[:S, :].reshape(1, C).astype(x.dtype)

    br, bc = _choose_blocks(B, C)
    grid = (B // br, C // bc)

    itemsize = jnp.dtype(x.dtype).itemsize
    cost = pl.CostEstimate(
        flops=B * C,
        bytes_accessed=2 * B * C * itemsize + C * itemsize,
        transcendentals=0,
    )

    out2 = pl.pallas_call(
        _add_pe_kernel,
        out_shape=jax.ShapeDtypeStruct((B, C), x.dtype),
        grid_spec=pltpu.PrefetchScalarGridSpec(
            num_scalar_prefetch=0,
            grid=grid,
            in_specs=[
                pl.BlockSpec((br, bc), lambda r, c: (r, c)),   # x tile
                pl.BlockSpec((1, C), lambda r, c: (0, 0)),     # pe: resident, DMA'd once
            ],
            out_specs=pl.BlockSpec((br, bc), lambda r, c: (r, c)),
        ),
        compiler_params=pltpu.CompilerParams(
            dimension_semantics=("parallel", "parallel"),
            vmem_limit_bytes=VMEM_LIMIT_BYTES,
        ),
        cost_estimate=cost,
    )(x2, pe2)

    return out2.reshape(B, S, d)


if __name__ == "__main__":
    key = jax.random.PRNGKey(0)
    B, S = 2, 8
    x = jax.random.normal(key, (B, S, D), dtype=jnp.float32)

    pe = jnp.asarray(build_pe_table(D, MAX_LEN))

    out = positional_encoding_forward(x, pe)
    out = jax.block_until_ready(out)

    # Reference check in plain JAX
    ref = x + pe[:S, :][None, :, :]
    np.testing.assert_allclose(np.asarray(out), np.asarray(ref), rtol=1e-6, atol=1e-6)

    print("KERNEL_OK")
</pallas_src>

<mosaic_0001>
module attributes {stable_mosaic.version = 11 : i64} {
  func.func @_add_pe_kernel(%arg0: i32, %arg1: i32, %arg2: memref<2x256xf32, #tpu.memory_space<vmem>>, %arg3: memref<1x256xf32, #tpu.memory_space<vmem>>, %arg4: memref<2x256xf32, #tpu.memory_space<vmem>>) attributes {dimension_semantics = [#tpu.dimension_semantics<parallel>, #tpu.dimension_semantics<parallel>], iteration_bounds = array<i64: 1, 1>, scalar_prefetch = 0 : i64, scratch_operands = 0 : i64, tpu.core_type = #tpu.core_type<tc>, window_params = [{transform_indices = @transform_0, window_bounds = array<i64: 2, 256>}, {pipeline_mode = #tpu.pipeline_mode<synchronous>, transform_indices = @transform_1, window_bounds = array<i64: 1, 256>}, {transform_indices = @transform_2, window_bounds = array<i64: 2, 256>}]} {
    %c0 = arith.constant 0 : index
    %c0_0 = arith.constant 0 : index
    %0 = vector.load %arg2[%c0, %c0_0] : memref<2x256xf32, #tpu.memory_space<vmem>>, vector<2x256xf32>
    %c256_i32 = arith.constant 256 : i32
    %1 = arith.muli %arg1, %c256_i32 : i32
    %c0_1 = arith.constant 0 : index
    %2 = arith.index_cast %1 : i32 to index
    %3 = vector.load %arg3[%c0_1, %2] : memref<1x256xf32, #tpu.memory_space<vmem>>, vector<1x256xf32>
    %4 = vector.broadcast %3 : vector<1x256xf32> to vector<2x256xf32>
    %5 = arith.addf %0, %4 : vector<2x256xf32>
    %c0_2 = arith.constant 0 : index
    %c0_3 = arith.constant 0 : index
    %6 = vector.load %arg4[%c0_2, %c0_3] : memref<2x256xf32, #tpu.memory_space<vmem>>, vector<2x256xf32>
    tpu.vector_store %arg4[%c0_2, %c0_3], %5 {strides = array<i32>} : memref<2x256xf32, #tpu.memory_space<vmem>>, vector<2x256xf32>,
    return
  }
  func.func @transform_0(%arg0: i32, %arg1: i32) -> (i32, i32) {
    %c0_i32 = arith.constant 0 : i32
    return %arg0, %arg1 : i32, i32
  }
  func.func @transform_1(%arg0: i32, %arg1: i32) -> (i32, i32) {
    %c0_i32 = arith.constant 0 : i32
    %c0_i32_0 = arith.constant 0 : i32
    %c0_i32_1 = arith.constant 0 : i32
    return %c0_i32, %c0_i32_0 : i32, i32
  }
  func.func @transform_2(%arg0: i32, %arg1: i32) -> (i32, i32) {
    %c0_i32 = arith.constant 0 : i32
    return %arg0, %arg1 : i32, i32
  }
}

</mosaic_0001>

<bundles_post_ra>
// kernel: tpu_custom_call.1
= control target key start
LH: loop header
LB: loop body
LE: loop exit
PB: predicated region body
PF: predicated region fallthrough
CT: control target
= control target key end

     0   :  { %7 = vsyncpa [#allocation3], 0  ;;  %s162_s0 = inlined_call_operand.hbm [shape: f32[2,256], index: 0, kind: input, shape index: {}]   ;;  %s163_s1 = inlined_call_operand.vmem [shape: f32[1,256], index: 1, kind: input, shape index: {}]   ;;  %s164_s2 = inlined_call_operand.hbm [shape: f32[2,256], index: 2, kind: output, shape index: {}]  }
   0x1   :  { %8 = vsyncpa [#allocation4], 0  ;;  %s117_s9 = smov [#allocation2]   ;;  %s69_s13 = scalar_lea.hbm %s162_s0, 64 }
   0x2   :  { %s15_s10 = sshll.u32 %s117_s9, 4  ;;  %p70_p0 = scmp.ne.s32.totalorder %s162_s0, %s69_s13  ;;  %s16_s10 = int_to_ptr.vmem [resolvable:$true] %s15_s10 }
   0x3   :  { %p73_p1 = scmp.lt.u32.totalorder %s69_s13, %s162_s0 }
   0x5   :  { %p75_p2 = pnand %p73_p1, %p70_p0 }
   0x7   :  { %78 = shalt.err (!%p75_p2)
}
   0x8   :  { %s79_s18 = scalar_lea.vmem %s16_s10, 64  ;;  %p84_p4 = scmp.lt.s32.totalorder %s16_s10, %s16_s10 }
   0x9   :  { %p80_p3 = scmp.ne.s32.totalorder %s16_s10, %s79_s18  ;;  %p85_p5 = scmp.lt.s32.totalorder %s79_s18, %s79_s18 }
   0xb   :  { %p86_p6 = por %p85_p5, %p84_p4 }
   0xd   :  { %p87_p7 = pnand %p86_p6, %p80_p3 }
   0xf   :  { %90 = shalt.err (!%p87_p7)
}
  0x10   :  { %18 = dma.hbm_to_vmem [thread:$0]  %s162_s0, 64, %s16_s10, [#allocation3]  }
  0x11   :  { %113 = dma.done.wait [#allocation3], 64  }
  0x12   :  { %114 = vsyncadd [#allocation3], 4294967232  ;;  %v31_v0 = vlaneseq  ;;  %v118_v1 = vmov 1983009808   ;;  %v29_v7 = vld [vmem:[%s163_s1] sm:$0x3] }
  0x13   :  { %v41_v2 = vunpack.c.l.s4 %v118_v1  ;;  %v24_v12 = vld [vmem:[#allocation2] sm:$0xf]  ;;  %s119_s23 = smov [#allocation5]  }
  0x14   :  { %v32_v3 = vshrl.u32 %v31_v0, 7  ;;  %s56_s0 = sshll.u32 %s119_s23, 4  ;;  %s57_s0 = int_to_ptr.vmem [resolvable:$true] %s56_s0 }
  0x15   :  { %v42_v6 = vunpack.c.0.s8 %v41_v2  ;;  %s91_s24 = scalar_lea.vmem %s57_s0, 64  ;;  %p96_p9 = scmp.lt.s32.totalorder %s57_s0, %s57_s0 }
  0x16   :  { %v33_v4 = vsub.s32 0, %v32_v3  ;;  %v37_v5 = vsub.s32 1, %v32_v3  ;;  %p92_p8 = scmp.ne.s32.totalorder %s57_s0, %s91_s24  ;;  %p97_p10 = scmp.lt.s32.totalorder %s91_s24, %s91_s24 }
  0x17   :  { %v45_v10 = vsub.s32 %v42_v6, %v32_v3 }
  0x18   :  { %v34_v8 = vrot.slane %v29_v7, %v33_v4  ;;  %v38_v9 = vrot.slane %v29_v7, %v37_v5  ;;  %p98_p11 = por %p97_p10, %p96_p9 }
  0x1a   :  { %v39_v11 = vcombine.low %v34_v8, %v38_v9  ;;  %p99_p12 = pnand %p98_p11, %p92_p8 }
  0x1c   :  { %v46_v13 = vrot.slane %v39_v11, %v45_v10 }
  0x1e   :  { %v48_v14 = vadd.f32 %v46_v13, %v24_v12 }
  0x20   :  { %49 = vst [vmem:[#allocation5] sm:$0xf] %v48_v14 }
  0x21   :  { %102 = shalt.err (!%p99_p12)
}
  0x22   :  { %s103_s26 = scalar_lea.hbm %s164_s2, 64 }
  0x23   :  { %p104_p13 = scmp.ne.s32.totalorder %s164_s2, %s103_s26  ;;  %p107_p0 = scmp.lt.u32.totalorder %s103_s26, %s164_s2 }
  0x25   :  { %p109_p1 = pnand %p107_p0, %p104_p13 }
  0x27   :  { %112 = shalt.err (!%p109_p1)
}
  0x28   :  { %59 = dma.vmem_to_hbm [thread:$0]  %s57_s0, 64, %s164_s2, [#allocation4]  }
  0x29   :  { %115 = dma.done.wait [#allocation4], 64  }
  0x2a   :  { %116 = vsyncadd [#allocation4], 4294967232 }
  0x2b   :  { %63 = vsyncpa [#allocation3], 1 }
  0x2c   :  { %64 = vsyncpa [#allocation4], 1 }

</bundles_post_ra>
